<compile_context>
chip_gen: v7x
topology: tpu7x:2x2x1
jax: 0.10.0
libtpu: 0.0.40
codegen_flags: <defaults>
</compile_context>

<pallas_src>
import functools

import jax
import jax.numpy as jnp
from jax.experimental import pallas as pl
from jax.experimental.pallas import tpu as pltpu


# --------------------------- device-aware knobs ------------------------------

@functools.lru_cache(maxsize=None)
def _device_kind():
    try:
        return jax.devices()[0].device_kind.lower()
    except Exception:
        return ""


def _target_lanes():
    """Packed row width: 256 lanes for the 2x256^2 MXUs (v6e/v7x), else 128."""
    k = _device_kind()
    return 256 if ("v6" in k or "v7" in k) else 128


def _vmem_limit():
    """Scoped VMEM cap: 64 MiB on 128-MiB-VMEM chips (v5*/v6e), 32 MiB on v7x."""
    k = _device_kind()
    return (64 << 20) if ("v5" in k or "v6" in k) else (32 << 20)


# ----------------------------- Pallas kernels --------------------------------

def _gelu(x):
    # TODO(synk): PyTorch nn.GELU defaults to the exact erf form; the tanh
    # approximation is used here (erf lowering support in Mosaic is uncertain).
    c = jnp.float32(0.7978845608028654)  # sqrt(2/pi)
    return 0.5 * x * (1.0 + jnp.tanh(c * (x + 0.044715 * x * x * x)))


def _pointwise_kernel(x_ref, w_ref, b_ref, s_ref, o_ref, *, apply_act):
    """Fused FNO layer tail: 1x1 conv (bf16 MXU) + bias + spectral residual
    (+ GELU).  Inputs/outputs are lane-packed bf16 rows; math is f32."""
    y = jnp.dot(x_ref[...], w_ref[...], preferred_element_type=jnp.float32)
    y = y + b_ref[...] + s_ref[...].astype(jnp.float32)
    if apply_act:
        y = _gelu(y)
    o_ref[...] = y.astype(o_ref.dtype)


def _proj_kernel(x_ref, w_ref, b_ref, o_ref):
    """Plain linear layer: bf16 MXU matmul, f32 accumulate, f32 bias add."""
    y = jnp.dot(x_ref[...], w_ref[...], preferred_element_type=jnp.float32)
    o_ref[...] = (y + b_ref[...]).astype(o_ref.dtype)


def _spectral_mix_kernel(x_ref, w_ref, o_ref):
    """Complex mode mixing for one group of g Fourier modes.

    x (B, g*2C) bf16      = [Re | Im] per mode, mode-major columns
    w (g*2C, g*2Cout)bf16 = block_diag over the g modes of [[wr, wi],[-wi, wr]]
    o (B, g*2Cout) f32    = [Re | Im] per mode, mode-major columns
    K = N = g*2C is a multiple of 128 -> lane-dense loads and stores."""
    o_ref[...] = jnp.dot(x_ref[...], w_ref[...],
                         preferred_element_type=jnp.float32)


# ------------------------------ tiling helpers --------------------------------

def _lane_pack(c, n, lanes=128):
    """Pixels packed per row so that pack * c fills `lanes` lanes (lane-dense).
    NOTE: if c does not divide 128 this silently falls back to pack=1 (legal
    but slower layout)."""
    if c >= lanes or lanes % c != 0:
        lanes = 128
    if c >= lanes or lanes % c != 0:
        return 1
    p = lanes // c
    while p > 1 and n % p != 0:
        p //= 2
    return p


def _kron_eye(w, p):
    """Block-diagonal expansion kron(I_p, w) so `p` packed pixels share one
    lane-dense matmul."""
    if p == 1:
        return w
    return jnp.kron(jnp.eye(p, dtype=w.dtype), w)


def _tile_bias(b, p):
    return jnp.tile(b.reshape(1, -1), (1, p))


def _choose_row_tile(n, max_tile=1024):
    """Largest row tile dividing n, multiple of 16, <= max_tile, preferring
    >= 4 grid steps (>= 2 per TensorCore on v7x so DMA still pipelines)."""
    cands = [t for t in range(16, min(n, max_tile) + 1, 16) if n % t == 0]
    if not cands:
        return n
    for min_steps in (4, 2):
        good = [t for t in cands if n // t >= min_steps]
        if good:
            return max(good)
    return max(cands)


def _choose_mode_group(m, k):
    """Smallest group size g (dividing m) with g*k a multiple of 128 so the
    spectral matmul has lane-dense K/N; falls back to all modes in one block."""
    for cap in (512, 4096):
        for g in range(1, m + 1):
            if m % g == 0 and (g * k) % 128 == 0 and g * k <= cap:
                return g
    return m


def _group_block_diag(w, g):
    """(M, K, N) per-mode weights -> (M*K, g*N): rows [i*g*K:(i+1)*g*K] hold
    block_diag(w[i*g], ..., w[i*g+g-1]) for mode group i."""
    m, k, n = w.shape
    if g == 1:
        return w.reshape(m * k, n)
    ng = m // g
    eye = jnp.eye(g, dtype=w.dtype)
    bd = jnp.einsum('mgkn,gh->mgkhn', w.reshape(ng, g, k, n), eye)
    return bd.reshape(ng * g * k, g * n)


# ------------------------------- wrappers --------------------------------------

def _row_call(kernel, x, w, b, extra=None, out_dtype=jnp.float32, max_tile=1024):
    """Row-tiled pallas_call for the per-pixel channel kernels.  Weights/bias
    use constant index_maps so they stay resident in VMEM across the grid."""
    n, cin = x.shape
    out_cols = w.shape[1]
    tm = _choose_row_tile(n, max_tile)
    in_specs = [
        pl.BlockSpec((tm, cin), lambda i: (i, 0)),
        pl.BlockSpec(w.shape, lambda i: (0, 0)),
        pl.BlockSpec(b.shape, lambda i: (0, 0)),
    ]
    args = [x, w, b]
    if extra is not None:
        in_specs.append(pl.BlockSpec((tm, out_cols), lambda i: (i, 0)))
        args.append(extra)
    return pl.pallas_call(
        kernel,
        out_shape=jax.ShapeDtypeStruct((n, out_cols), out_dtype),
        grid=(n // tm,),
        in_specs=in_specs,
        out_specs=pl.BlockSpec((tm, out_cols), lambda i: (i, 0)),
        compiler_params=pltpu.CompilerParams(
            dimension_semantics=("parallel",),
            vmem_limit_bytes=_vmem_limit()),
    )(*args)


def _spectral_conv(h4, w_spec, m1, m2):
    """SpectralConv2d: rfft2 -> Pallas grouped complex mode mixing -> irfft2.

    h4     : (B, H, W, C) f32 real field
    w_spec : (M*2C, g*2Cout) bf16, block-diagonal per group of g modes
    """
    bsz, hh, ww, c = h4.shape
    m = 2 * m1 * m2
    two_c = 2 * c
    g = _choose_mode_group(m, two_c)
    two_cout = w_spec.shape[1] // g
    cout = two_cout // 2
    wf = ww // 2 + 1

    # TODO(synk): FFT has no Pallas primitive; rfft2/irfft2 stay in plain JAX.
    x_ft = jnp.fft.rfft2(h4, axes=(1, 2))                       # (B,H,Wf,C) c64

    # Retained corner modes, kept batch-first so no big transposes are needed.
    xm = jnp.concatenate([x_ft[:, :m1, :m2, :],
                          x_ft[:, hh - m1:, :m2, :]], axis=1)   # (B, 2m1, m2, C)
    xm = xm.reshape(bsz, m, c)
    lhs = jnp.concatenate([xm.real, xm.imag], axis=-1)          # (B, M, 2C)
    lhs = lhs.reshape(bsz, m * two_c).astype(jnp.bfloat16)      # lane-dense rows

    gk = g * two_c                                              # K (mult of 128)
    gn = g * two_cout                                           # N (mult of 128)
    # NOTE: at production sizes pipeline_mode=pl.Buffered(3) on the rhs spec
    # could hide the per-step weight DMA; omitted here for simplicity.
    out = pl.pallas_call(
        _spectral_mix_kernel,
        out_shape=jax.ShapeDtypeStruct((bsz, (m // g) * gn), jnp.float32),
        grid=(m // g,),
        in_specs=[
            pl.BlockSpec((bsz, gk), lambda i: (0, i)),
            pl.BlockSpec((gk, gn), lambda i: (i, 0)),
        ],
        out_specs=pl.BlockSpec((bsz, gn), lambda i: (0, i)),
        compiler_params=pltpu.CompilerParams(
            dimension_semantics=("parallel",),
            vmem_limit_bytes=_vmem_limit()),
    )(lhs, w_spec)

    out = out.reshape(bsz, m, two_cout)                         # mode-major cols
    out_c = jax.lax.complex(out[..., :cout], out[..., cout:])   # (B, M, Cout)
    out_c = out_c.reshape(bsz, 2 * m1, m2, cout)

    out_ft = jnp.zeros((bsz, hh, wf, cout), jnp.complex64)
    out_ft = out_ft.at[:, :m1, :m2, :].set(out_c[:, :m1])
    out_ft = out_ft.at[:, hh - m1:, :m2, :].set(out_c[:, m1:])
    x1 = jnp.fft.irfft2(out_ft, s=(hh, ww), axes=(1, 2))
    return x1.astype(jnp.float32)


def fno2d_forward(x, packed, *, num_layers, modes1, modes2):
    """Equivalent of FNO2D.forward.  x: (B, H, W, 3) -> (B, H, W, num_Y)."""
    bsz, hh, ww, _ = x.shape
    n = bsz * hh * ww
    width = packed["in_w"].shape[1]
    pack = _lane_pack(width, n, _target_lanes())
    row_w = pack * width

    # ---- input projector: Linear(3, width), K=3 -> plain XLA (see review) ----
    h = jnp.einsum('bhwi,io->bhwo', x, packed["in_w"]) + packed["in_b"]
    hcur = h.reshape(n // pack, row_w).astype(jnp.bfloat16)

    # ---- FNO layers: spectral conv + fused (1x1 conv + residual + GELU) -----
    for l in range(num_layers):
        lp = packed["layers"][l]
        spec = _spectral_conv(hcur.reshape(bsz, hh, ww, width).astype(jnp.float32),
                              lp["w_spec"], modes1, modes2)
        spec_rows = spec.reshape(n // pack, row_w).astype(jnp.bfloat16)
        kern = functools.partial(_pointwise_kernel,
                                 apply_act=(l != num_layers - 1))
        hcur = _row_call(kern, hcur, lp["pw_w"], lp["pw_b"],
                         extra=spec_rows, out_dtype=jnp.bfloat16)

    # ---- output projector: repacked so stored last dim is pack_out*num_y ----
    pack_out = packed["out_w"].shape[0] // width
    x_out = hcur.reshape(n // pack_out, pack_out * width)
    y = _row_call(_proj_kernel, x_out, packed["out_w"], packed["out_b"],
                  out_dtype=jnp.float32)
    return y.reshape(bsz, hh, ww, -1)


# ------------------------------ parameters -------------------------------------

def init_params(key, num_layers, width, modes1, modes2, num_y):
    """Raw parameters in their PyTorch-like shapes."""
    keys = jax.random.split(key, 4 + 4 * num_layers)
    p = {}
    p["in_w"] = jax.random.normal(keys[0], (3, width), jnp.float32) * 0.1
    p["in_b"] = jax.random.normal(keys[1], (width,), jnp.float32) * 0.01
    p["out_w"] = jax.random.normal(keys[2], (width, num_y), jnp.float32) * 0.1
    p["out_b"] = jax.random.normal(keys[3], (num_y,), jnp.float32) * 0.01
    scale = 1.0 / (width * width)
    m = 2 * modes1 * modes2
    layers = []
    for l in range(num_layers):
        k0, k1, k2, k3 = keys[4 + 4 * l: 8 + 4 * l]
        layers.append({
            "w_r": scale * jax.random.uniform(k0, (m, width, width), jnp.float32),
            "w_i": scale * jax.random.uniform(k1, (m, width, width), jnp.float32),
            "pw_w": jax.random.normal(k2, (width, width), jnp.float32) * 0.1,
            "pw_b": jax.random.normal(k3, (width,), jnp.float32) * 0.01,
        })
    p["layers"] = layers
    return p


def pack_params(params, n_pixels):
    """One-time, outside-jit packing into kernel-ready layouts: kron-expanded
    lane-dense weights, bf16 casts, tiled biases, grouped block-diag spectral
    weights in the real 2x2 form [[wr, wi], [-wi, wr]]."""
    width = params["in_w"].shape[1]
    num_y = params["out_w"].shape[1]
    pack = _lane_pack(width, n_pixels, _target_lanes())
    pack_out = _lane_pack(num_y, n_pixels, 128)

    packed = {
        "in_w": params["in_w"],
        "in_b": params["in_b"],
        "out_w": _kron_eye(params["out_w"], pack_out).astype(jnp.bfloat16),
        "out_b": _tile_bias(params["out_b"], pack_out),
        "layers": [],
    }
    for lp in params["layers"]:
        m, c, _ = lp["w_r"].shape
        w_spec = jnp.concatenate(
            [jnp.concatenate([lp["w_r"], lp["w_i"]], axis=-1),
             jnp.concatenate([-lp["w_i"], lp["w_r"]], axis=-1)],
            axis=1)                                              # (M, 2C, 2Cout)
        g = _choose_mode_group(m, 2 * c)
        packed["layers"].append({
            "w_spec": _group_block_diag(w_spec, g).astype(jnp.bfloat16),
            "pw_w": _kron_eye(lp["pw_w"], pack).astype(jnp.bfloat16),
            "pw_b": _tile_bias(lp["pw_b"], pack),
        })
    return packed


# --------------------------------- main ------------------------------------------

if __name__ == "__main__":
    num_layers = 3
    width = 32
    modes1 = 4
    modes2 = 4
    num_y = 2
    B, H, W = 2, 16, 16

    key = jax.random.PRNGKey(0)
    kx, kp = jax.random.split(key)
    x = jax.random.normal(kx, (B, H, W, 3), jnp.float32)
    raw_params = init_params(kp, num_layers, width, modes1, modes2, num_y)
    params = pack_params(raw_params, B * H * W)   # one-time packing, outside jit

    fwd = jax.jit(functools.partial(fno2d_forward, num_layers=num_layers,
                                    modes1=modes1, modes2=modes2))
    out = fwd(x, params)
    jax.block_until_ready(out)
    assert out.shape == (B, H, W, num_y)
    assert bool(jnp.all(jnp.isfinite(out)))
    print("KERNEL_OK")
</pallas_src>

<mosaic_0001>
module attributes {stable_mosaic.version = 11 : i64} {
  func.func @_spectral_mix_kernel(%arg0: i32, %arg1: memref<2x128xbf16, #tpu.memory_space<vmem>>, %arg2: memref<128x128xbf16, #tpu.memory_space<vmem>>, %arg3: memref<2x128xf32, #tpu.memory_space<vmem>>) attributes {dimension_semantics = [#tpu.dimension_semantics<parallel>], iteration_bounds = array<i64: 16>, scalar_prefetch = 0 : i64, scratch_operands = 0 : i64, tpu.core_type = #tpu.core_type<tc>, window_params = [{transform_indices = @transform_0, window_bounds = array<i64: 2, 128>}, {transform_indices = @transform_1, window_bounds = array<i64: 128, 128>}, {transform_indices = @transform_2, window_bounds = array<i64: 2, 128>}]} {
    %c0 = arith.constant 0 : index
    %c0_0 = arith.constant 0 : index
    %0 = vector.load %arg1[%c0, %c0_0] : memref<2x128xbf16, #tpu.memory_space<vmem>>, vector<2x128xbf16>
    %c0_1 = arith.constant 0 : index
    %c0_2 = arith.constant 0 : index
    %1 = vector.load %arg2[%c0_1, %c0_2] : memref<128x128xbf16, #tpu.memory_space<vmem>>, vector<128x128xbf16>
    %cst = arith.constant dense<0.000000e+00> : vector<2x128xf32>
    %2 = tpu.matmul %0, %1, %cst {dimension_numbers = #tpu.dot_dimension_numbers<[1], [0], [0], [1], [0, 0, 1, 1], [], []>} : vector<2x128xbf16>, vector<128x128xbf16>, vector<2x128xf32> -> vector<2x128xf32>
    %c0_3 = arith.constant 0 : index
    %c0_4 = arith.constant 0 : index
    %3 = vector.load %arg3[%c0_3, %c0_4] : memref<2x128xf32, #tpu.memory_space<vmem>>, vector<2x128xf32>
    tpu.vector_store %arg3[%c0_3, %c0_4], %2 {strides = array<i32>} : memref<2x128xf32, #tpu.memory_space<vmem>>, vector<2x128xf32>,
    return
  }
  func.func @transform_0(%arg0: i32) -> (i32, i32) {
    %c0_i32 = arith.constant 0 : i32
    %c0_i32_0 = arith.constant 0 : i32
    return %c0_i32, %arg0 : i32, i32
  }
  func.func @transform_1(%arg0: i32) -> (i32, i32) {
    %c0_i32 = arith.constant 0 : i32
    %c0_i32_0 = arith.constant 0 : i32
    return %arg0, %c0_i32 : i32, i32
  }
  func.func @transform_2(%arg0: i32) -> (i32, i32) {
    %c0_i32 = arith.constant 0 : i32
    %c0_i32_0 = arith.constant 0 : i32
    return %c0_i32, %arg0 : i32, i32
  }
}

module attributes {stable_mosaic.version = 11 : i64} {
  func.func @_pointwise_kernel(%arg0: i32, %arg1: memref<32x128xbf16, #tpu.memory_space<vmem>>, %arg2: memref<128x128xbf16, #tpu.memory_space<vmem>>, %arg3: memref<1x128xf32, #tpu.memory_space<vmem>>, %arg4: memref<32x128xbf16, #tpu.memory_space<vmem>>, %arg5: memref<32x128xbf16, #tpu.memory_space<vmem>>) attributes {dimension_semantics = [#tpu.dimension_semantics<parallel>], iteration_bounds = array<i64: 4>, scalar_prefetch = 0 : i64, scratch_operands = 0 : i64, tpu.core_type = #tpu.core_type<tc>, window_params = [{transform_indices = @transform_0, window_bounds = array<i64: 32, 128>}, {pipeline_mode = #tpu.pipeline_mode<synchronous>, transform_indices = @transform_1, window_bounds = array<i64: 128, 128>}, {pipeline_mode = #tpu.pipeline_mode<synchronous>, transform_indices = @transform_2, window_bounds = array<i64: 1, 128>}, {transform_indices = @transform_3, window_bounds = array<i64: 32, 128>}, {transform_indices = @transform_4, window_bounds = array<i64: 32, 128>}]} {
    %c0 = arith.constant 0 : index
    %c0_0 = arith.constant 0 : index
    %0 = vector.load %arg1[%c0, %c0_0] : memref<32x128xbf16, #tpu.memory_space<vmem>>, vector<32x128xbf16>
    %c0_1 = arith.constant 0 : index
    %c0_2 = arith.constant 0 : index
    %1 = vector.load %arg2[%c0_1, %c0_2] : memref<128x128xbf16, #tpu.memory_space<vmem>>, vector<128x128xbf16>
    %cst = arith.constant dense<0.000000e+00> : vector<32x128xf32>
    %2 = tpu.matmul %0, %1, %cst {dimension_numbers = #tpu.dot_dimension_numbers<[1], [0], [0], [1], [0, 0, 1, 1], [], []>} : vector<32x128xbf16>, vector<128x128xbf16>, vector<32x128xf32> -> vector<32x128xf32>
    %c0_3 = arith.constant 0 : index
    %c0_4 = arith.constant 0 : index
    %3 = vector.load %arg3[%c0_3, %c0_4] : memref<1x128xf32, #tpu.memory_space<vmem>>, vector<1x128xf32>
    %4 = vector.broadcast %3 : vector<1x128xf32> to vector<32x128xf32>
    %5 = arith.addf %2, %4 : vector<32x128xf32>
    %c0_5 = arith.constant 0 : index
    %c0_6 = arith.constant 0 : index
    %6 = vector.load %arg4[%c0_5, %c0_6] : memref<32x128xbf16, #tpu.memory_space<vmem>>, vector<32x128xbf16>
    %7 = arith.extf %6 : vector<32x128xbf16> to vector<32x128xf32>
    %8 = arith.addf %5, %7 : vector<32x128xf32>
    %cst_7 = arith.constant 5.000000e-01 : f32
    %9 = vector.broadcast %cst_7 : f32 to vector<32x128xf32>
    %10 = arith.mulf %9, %8 : vector<32x128xf32>
    %cst_8 = arith.constant 4.471500e-02 : f32
    %11 = vector.broadcast %cst_8 : f32 to vector<32x128xf32>
    %12 = arith.mulf %11, %8 : vector<32x128xf32>
    %13 = arith.mulf %12, %8 : vector<32x128xf32>
    %14 = arith.mulf %13, %8 : vector<32x128xf32>
    %15 = arith.addf %8, %14 : vector<32x128xf32>
    %cst_9 = arith.constant 0.797884583 : f32
    %16 = vector.broadcast %cst_9 : f32 to vector<32x128xf32>
    %17 = arith.mulf %16, %15 : vector<32x128xf32>
    %18 = math.tanh %17 : vector<32x128xf32>
    %cst_10 = arith.constant 1.000000e+00 : f32
    %19 = vector.broadcast %cst_10 : f32 to vector<32x128xf32>
    %20 = arith.addf %19, %18 : vector<32x128xf32>
    %21 = arith.mulf %10, %20 : vector<32x128xf32>
    %22 = arith.truncf %21 : vector<32x128xf32> to vector<32x128xbf16>
    %c0_11 = arith.constant 0 : index
    %c0_12 = arith.constant 0 : index
    %23 = vector.load %arg5[%c0_11, %c0_12] : memref<32x128xbf16, #tpu.memory_space<vmem>>, vector<32x128xbf16>
    tpu.vector_store %arg5[%c0_11, %c0_12], %22 {strides = array<i32>} : memref<32x128xbf16, #tpu.memory_space<vmem>>, vector<32x128xbf16>,
    return
  }
  func.func @transform_0(%arg0: i32) -> (i32, i32) {
    %c0_i32 = arith.constant 0 : i32
    %c0_i32_0 = arith.constant 0 : i32
    return %arg0, %c0_i32 : i32, i32
  }
  func.func @transform_1(%arg0: i32) -> (i32, i32) {
    %c0_i32 = arith.constant 0 : i32
    %c0_i32_0 = arith.constant 0 : i32
    %c0_i32_1 = arith.constant 0 : i32
    return %c0_i32, %c0_i32_0 : i32, i32
  }
  func.func @transform_2(%arg0: i32) -> (i32, i32) {
    %c0_i32 = arith.constant 0 : i32
    %c0_i32_0 = arith.constant 0 : i32
    %c0_i32_1 = arith.constant 0 : i32
    return %c0_i32, %c0_i32_0 : i32, i32
  }
  func.func @transform_3(%arg0: i32) -> (i32, i32) {
    %c0_i32 = arith.constant 0 : i32
    %c0_i32_0 = arith.constant 0 : i32
    return %arg0, %c0_i32 : i32, i32
  }
  func.func @transform_4(%arg0: i32) -> (i32, i32) {
    %c0_i32 = arith.constant 0 : i32
    %c0_i32_0 = arith.constant 0 : i32
    return %arg0, %c0_i32 : i32, i32
  }
}

module attributes {stable_mosaic.version = 11 : i64} {
  func.func @_pointwise_kernel(%arg0: i32, %arg1: memref<32x128xbf16, #tpu.memory_space<vmem>>, %arg2: memref<128x128xbf16, #tpu.memory_space<vmem>>, %arg3: memref<1x128xf32, #tpu.memory_space<vmem>>, %arg4: memref<32x128xbf16, #tpu.memory_space<vmem>>, %arg5: memref<32x128xbf16, #tpu.memory_space<vmem>>) attributes {dimension_semantics = [#tpu.dimension_semantics<parallel>], iteration_bounds = array<i64: 4>, scalar_prefetch = 0 : i64, scratch_operands = 0 : i64, tpu.core_type = #tpu.core_type<tc>, window_params = [{transform_indices = @transform_0, window_bounds = array<i64: 32, 128>}, {pipeline_mode = #tpu.pipeline_mode<synchronous>, transform_indices = @transform_1, window_bounds = array<i64: 128, 128>}, {pipeline_mode = #tpu.pipeline_mode<synchronous>, transform_indices = @transform_2, window_bounds = array<i64: 1, 128>}, {transform_indices = @transform_3, window_bounds = array<i64: 32, 128>}, {transform_indices = @transform_4, window_bounds = array<i64: 32, 128>}]} {
    %c0 = arith.constant 0 : index
    %c0_0 = arith.constant 0 : index
    %0 = vector.load %arg1[%c0, %c0_0] : memref<32x128xbf16, #tpu.memory_space<vmem>>, vector<32x128xbf16>
    %c0_1 = arith.constant 0 : index
    %c0_2 = arith.constant 0 : index
    %1 = vector.load %arg2[%c0_1, %c0_2] : memref<128x128xbf16, #tpu.memory_space<vmem>>, vector<128x128xbf16>
    %cst = arith.constant dense<0.000000e+00> : vector<32x128xf32>
    %2 = tpu.matmul %0, %1, %cst {dimension_numbers = #tpu.dot_dimension_numbers<[1], [0], [0], [1], [0, 0, 1, 1], [], []>} : vector<32x128xbf16>, vector<128x128xbf16>, vector<32x128xf32> -> vector<32x128xf32>
    %c0_3 = arith.constant 0 : index
    %c0_4 = arith.constant 0 : index
    %3 = vector.load %arg3[%c0_3, %c0_4] : memref<1x128xf32, #tpu.memory_space<vmem>>, vector<1x128xf32>
    %4 = vector.broadcast %3 : vector<1x128xf32> to vector<32x128xf32>
    %5 = arith.addf %2, %4 : vector<32x128xf32>
    %c0_5 = arith.constant 0 : index
    %c0_6 = arith.constant 0 : index
    %6 = vector.load %arg4[%c0_5, %c0_6] : memref<32x128xbf16, #tpu.memory_space<vmem>>, vector<32x128xbf16>
    %7 = arith.extf %6 : vector<32x128xbf16> to vector<32x128xf32>
    %8 = arith.addf %5, %7 : vector<32x128xf32>
    %9 = arith.truncf %8 : vector<32x128xf32> to vector<32x128xbf16>
    %c0_7 = arith.constant 0 : index
    %c0_8 = arith.constant 0 : index
    %10 = vector.load %arg5[%c0_7, %c0_8] : memref<32x128xbf16, #tpu.memory_space<vmem>>, vector<32x128xbf16>
    tpu.vector_store %arg5[%c0_7, %c0_8], %9 {strides = array<i32>} : memref<32x128xbf16, #tpu.memory_space<vmem>>, vector<32x128xbf16>,
    return
  }
  func.func @transform_0(%arg0: i32) -> (i32, i32) {
    %c0_i32 = arith.constant 0 : i32
    %c0_i32_0 = arith.constant 0 : i32
    return %arg0, %c0_i32 : i32, i32
  }
  func.func @transform_1(%arg0: i32) -> (i32, i32) {
    %c0_i32 = arith.constant 0 : i32
    %c0_i32_0 = arith.constant 0 : i32
    %c0_i32_1 = arith.constant 0 : i32
    return %c0_i32, %c0_i32_0 : i32, i32
  }
  func.func @transform_2(%arg0: i32) -> (i32, i32) {
    %c0_i32 = arith.constant 0 : i32
    %c0_i32_0 = arith.constant 0 : i32
    %c0_i32_1 = arith.constant 0 : i32
    return %c0_i32, %c0_i32_0 : i32, i32
  }
  func.func @transform_3(%arg0: i32) -> (i32, i32) {
    %c0_i32 = arith.constant 0 : i32
    %c0_i32_0 = arith.constant 0 : i32
    return %arg0, %c0_i32 : i32, i32
  }
  func.func @transform_4(%arg0: i32) -> (i32, i32) {
    %c0_i32 = arith.constant 0 : i32
    %c0_i32_0 = arith.constant 0 : i32
    return %arg0, %c0_i32 : i32, i32
  }
}

module attributes {stable_mosaic.version = 11 : i64} {
  func.func @_proj_kernel(%arg0: i32, %arg1: memref<8x2048xbf16, #tpu.memory_space<vmem>>, %arg2: memref<2048x128xbf16, #tpu.memory_space<vmem>>, %arg3: memref<1x128xf32, #tpu.memory_space<vmem>>, %arg4: memref<8x128xf32, #tpu.memory_space<vmem>>) attributes {dimension_semantics = [#tpu.dimension_semantics<parallel>], iteration_bounds = array<i64: 1>, scalar_prefetch = 0 : i64, scratch_operands = 0 : i64, tpu.core_type = #tpu.core_type<tc>, window_params = [{transform_indices = @transform_0, window_bounds = array<i64: 8, 2048>}, {pipeline_mode = #tpu.pipeline_mode<synchronous>, transform_indices = @transform_1, window_bounds = array<i64: 2048, 128>}, {pipeline_mode = #tpu.pipeline_mode<synchronous>, transform_indices = @transform_2, window_bounds = array<i64: 1, 128>}, {transform_indices = @transform_3, window_bounds = array<i64: 8, 128>}]} {
    %c0 = arith.constant 0 : index
    %c0_0 = arith.constant 0 : index
    %0 = vector.load %arg1[%c0, %c0_0] : memref<8x2048xbf16, #tpu.memory_space<vmem>>, vector<8x2048xbf16>
    %c0_1 = arith.constant 0 : index
    %c0_2 = arith.constant 0 : index
    %1 = vector.load %arg2[%c0_1, %c0_2] : memref<2048x128xbf16, #tpu.memory_space<vmem>>, vector<2048x128xbf16>
    %cst = arith.constant dense<0.000000e+00> : vector<8x128xf32>
    %2 = tpu.matmul %0, %1, %cst {dimension_numbers = #tpu.dot_dimension_numbers<[1], [0], [0], [1], [0, 0, 1, 1], [], []>} : vector<8x2048xbf16>, vector<2048x128xbf16>, vector<8x128xf32> -> vector<8x128xf32>
    %c0_3 = arith.constant 0 : index
    %c0_4 = arith.constant 0 : index
    %3 = vector.load %arg3[%c0_3, %c0_4] : memref<1x128xf32, #tpu.memory_space<vmem>>, vector<1x128xf32>
    %4 = vector.broadcast %3 : vector<1x128xf32> to vector<8x128xf32>
    %5 = arith.addf %2, %4 : vector<8x128xf32>
    %c0_5 = arith.constant 0 : index
    %c0_6 = arith.constant 0 : index
    %6 = vector.load %arg4[%c0_5, %c0_6] : memref<8x128xf32, #tpu.memory_space<vmem>>, vector<8x128xf32>
    tpu.vector_store %arg4[%c0_5, %c0_6], %5 {strides = array<i32>} : memref<8x128xf32, #tpu.memory_space<vmem>>, vector<8x128xf32>,
    return
  }
  func.func @transform_0(%arg0: i32) -> (i32, i32) {
    %c0_i32 = arith.constant 0 : i32
    %c0_i32_0 = arith.constant 0 : i32
    return %arg0, %c0_i32 : i32, i32
  }
  func.func @transform_1(%arg0: i32) -> (i32, i32) {
    %c0_i32 = arith.constant 0 : i32
    %c0_i32_0 = arith.constant 0 : i32
    %c0_i32_1 = arith.constant 0 : i32
    return %c0_i32, %c0_i32_0 : i32, i32
  }
  func.func @transform_2(%arg0: i32) -> (i32, i32) {
    %c0_i32 = arith.constant 0 : i32
    %c0_i32_0 = arith.constant 0 : i32
    %c0_i32_1 = arith.constant 0 : i32
    return %c0_i32, %c0_i32_0 : i32, i32
  }
  func.func @transform_3(%arg0: i32) -> (i32, i32) {
    %c0_i32 = arith.constant 0 : i32
    %c0_i32_0 = arith.constant 0 : i32
    return %arg0, %c0_i32 : i32, i32
  }
}

</mosaic_0001>

<bundles_post_ra>
// kernel: fno2d_forward.7
= control target key start
LH: loop header
LB: loop body
LE: loop exit
PB: predicated region body
PF: predicated region fallthrough
CT: control target
= control target key end

     0   :  { %s417_s9 = smov 0   ;;  %s442_s0 = inlined_call_operand.vmem [shape: bf16[2,2048], index: 0, kind: input, shape index: {}]   ;;  %s443_s1 = inlined_call_operand.vmem [shape: bf16[2048,128], index: 1, kind: input, shape index: {}]   ;;  %s444_s2 = inlined_call_operand.vmem [shape: f32[2,2048], index: 2, kind: output, shape index: {}]  }
   0x1 LB: > { %s423_s10 = sadd.s32 4294967295, %s398_s9   ;;  %p331_p0 = scmp.ge.s32.totalorder %s398_s9, 1  ;;  %s398_s9 = sphi %s417_s9, %s12_s9  }
   0x2   : > { %p121_p1 = scmp.lt.s32.totalorder %s398_s9, 17 }
   0x4   : > { %p122_p2 = pnand %p331_p0, %p121_p1 }
   0x5   : > { %s332_s11 = sshll.u32 (!%p122_p2), %s423_s10, 4  ;;  %v400_v0 = vmov (!%p122_p2), 0.0   ;;  %vm401_vm0 = vmmov (!%p122_p2), 0   ;;  %p145_p4 = scmp.lt.s32.totalorder (!%p122_p2), %s423_s10, 15 }
   0x6   : > { %125 = sbr.rel (%p122_p2) target bundleno = 263 (0x107), region = 28  ;;  %354 = vmatprep.subr.bf16.mxu0 (!%p122_p2), %v400_v0  ;;  %p149_p3 = scmp.lt.s32.totalorder (!%p122_p2), %s332_s11, 255  ;;  %370 = vmatprep.mubr.msk.bf16.mxu0 (!%p122_p2), %vm401_vm0, %v400_v0 }
   0xd   : > { %s446_s11 = smov (!%p149_p3, %s332_s11), 255  ;;  %s448_s10 = smov (!%p145_p4, %s423_s10), 15 }
   0xe   : > { %s333_s12 = sshll.u32 %s446_s11, 2  ;;  %s147_s18 = scalar_lea.vmem %s442_s0, %s448_s10 }
   0xf   : > { %s152_s15 = scalar_lea.vmem %s443_s1, %s333_s12  ;;  %v159_v9 = vld [vmem:[%s147_s18] sm:$0x1]  ;;  %s334_s19 = sshll.u32 %s448_s10, 1 }
  0x10   : > { %v384_v1 = vld [vmem:[%s152_s15] sm:$0xff]   ;;  %v385_v2 = vld [vmem:[%s152_s15 + $0x8] sm:$0xff]   ;;  %v386_v3 = vld [vmem:[%s152_s15 + $0x10] sm:$0xff]   ;;  %s157_s22 = scalar_lea.vmem %s444_s2, %s334_s19 }
  0x11   : > { %355 = vmatpush3.bf16.msra.mxu0 %v384_v1  ;;  %v387_v4 = vld [vmem:[%s152_s15 + $0x18] sm:$0xff]   ;;  %v388_v5 = vld [vmem:[%s152_s15 + $0x20] sm:$0xff]   ;;  %v389_v6 = vld [vmem:[%s152_s15 + $0x28] sm:$0xff]  }
  0x12   : > { %356 = vmatprep.subr.bf16.mxu0 %v400_v0  ;;  %v390_v7 = vld [vmem:[%s152_s15 + $0x30] sm:$0xff]   ;;  %v391_v8 = vld [vmem:[%s152_s15 + $0x38] sm:$0xff]  }
  0x15   : > { %357 = vmatpush3.bf16.msra.mxu0 %v385_v2 }
  0x16   : > { %358 = vmatprep.subr.bf16.mxu0 %v400_v0 }
  0x19   : > { %359 = vmatpush3.bf16.msra.mxu0 %v386_v3 }
  0x1a   : > { %360 = vmatprep.subr.bf16.mxu0 %v400_v0 }
  0x1d   : > { %361 = vmatpush3.bf16.msra.mxu0 %v387_v4 }
  0x1e   : > { %362 = vmatprep.subr.bf16.mxu0 %v400_v0 }
  0x21   : > { %363 = vmatpush3.bf16.msra.mxu0 %v388_v5 }
  0x22   : > { %364 = vmatprep.subr.bf16.mxu0 %v400_v0 }
  0x25   : > { %365 = vmatpush3.bf16.msra.mxu0 %v389_v6 }
  0x26   : > { %366 = vmatprep.subr.bf16.mxu0 %v400_v0 }
  0x29   : > { %367 = vmatpush3.bf16.msra.mxu0 %v390_v7 }
  0x2a   : > { %368 = vmatprep.subr.bf16.mxu0 %v400_v0 }
  0x2d   : > { %369 = vmatpush3.bf16.msra.mxu0 %v391_v8 }
  0x30   : > { %371 = vmatmul.mubr.bf16.vlgmr.msra.gmra.mrb[0].mxu0 %v159_v9 }
 0x103   : > { %v258_v10 = vpop.f32.mrb[0].mxu0 }
 0x104   : > { %264 = vst [vmem:[%s157_s22] sm:$0x3] %v258_v10  ;;  %v372_v11 = vpop.f32.mrb[1].mxu0 }
 0x105   : > { %v261_v12 = vpop.f32.mrb[2].mxu0 }
 0x106   : > { %v373_v13 = vpop.f32.mrb[3].mxu0 }
 0x107 PF: > { %s12_s9 = sadd.s32 1, %s398_s9  }
 0x108   : > { %p9_p5 = scmp.ge.s32.totalorder %s12_s9, 18  }
 0x10a   :  { %11 = sbr.rel (!%p9_p5) target bundleno = 1 (0x1), region = 61 }

// kernel: reverse.6
= control target key start
LH: loop header
LB: loop body
LE: loop exit
PB: predicated region body
PF: predicated region fallthrough
CT: control target
= control target key end

     0   :  { %s344_s0 = inlined_call_operand.vmem [shape: f32[2,32,16,7], index: 0, kind: input, shape index: {}]   ;;  %s345_s1 = inlined_call_operand.vmem [shape: f32[2,32,16,7], index: 1, kind: output, shape index: {}]  }
   0x1   :  { %v112_v0 = vld [vmem:[%s344_s0 + $0x60] sm:$0xff]  ;;  %v113_v1 = vld [vmem:[%s344_s0 + $0xd0] sm:$0xff]  ;;  %v138_v14 = vld [vmem:[%s344_s0 + $0x68] sm:$0xff] }
   0x2   :  { %v115_v2 = vld [vmem:[%s344_s0 + $0x50] sm:$0xff]  ;;  %4 = vst [vmem:[%s345_s1] sm:$0xff] %v112_v0  ;;  %114 = vst [vmem:[%s345_s1 + $0x70] sm:$0xff] %v113_v1  ;;  %v117_v3 = vld [vmem:[%s344_s0 + $0xc0] sm:$0xff] }
   0x3   :  { %116 = vst [vmem:[%s345_s1 + $0x10] sm:$0xff] %v115_v2  ;;  %v119_v4 = vld [vmem:[%s344_s0 + $0x40] sm:$0xff]  ;;  %v121_v5 = vld [vmem:[%s344_s0 + $0xb0] sm:$0xff]  ;;  %118 = vst [vmem:[%s345_s1 + $0x80] sm:$0xff] %v117_v3 }
   0x4   :  { %120 = vst [vmem:[%s345_s1 + $0x20] sm:$0xff] %v119_v4  ;;  %122 = vst [vmem:[%s345_s1 + $0x90] sm:$0xff] %v121_v5  ;;  %v123_v6 = vld [vmem:[%s344_s0 + $0x30] sm:$0xff]  ;;  %v125_v7 = vld [vmem:[%s344_s0 + $0xa0] sm:$0xff] }
   0x5   :  { %v127_v8 = vld [vmem:[%s344_s0 + $0x20] sm:$0xff]  ;;  %124 = vst [vmem:[%s345_s1 + $0x30] sm:$0xff] %v123_v6  ;;  %126 = vst [vmem:[%s345_s1 + $0xa0] sm:$0xff] %v125_v7  ;;  %v129_v9 = vld [vmem:[%s344_s0 + $0x90] sm:$0xff] }
   0x6   :  { %128 = vst [vmem:[%s345_s1 + $0x40] sm:$0xff] %v127_v8  ;;  %v131_v10 = vld [vmem:[%s344_s0 + $0x10] sm:$0xff]  ;;  %v133_v11 = vld [vmem:[%s344_s0 + $0x80] sm:$0xff]  ;;  %130 = vst [vmem:[%s345_s1 + $0xb0] sm:$0xff] %v129_v9 }
   0x7   :  { %132 = vst [vmem:[%s345_s1 + $0x50] sm:$0xff] %v131_v10  ;;  %134 = vst [vmem:[%s345_s1 + $0xc0] sm:$0xff] %v133_v11  ;;  %v49_v12 = vld [vmem:[%s344_s0] sm:$0xff]  ;;  %v136_v13 = vld [vmem:[%s344_s0 + $0x70] sm:$0xff] }
   0x8   :  { %135 = vst [vmem:[%s345_s1 + $0x60] sm:$0xff] %v49_v12  ;;  %137 = vst [vmem:[%s345_s1 + $0xd0] sm:$0xff] %v136_v13  ;;  %v140_v15 = vld [vmem:[%s344_s0 + $0xd8] sm:$0xff]  ;;  %v144_v17 = vld [vmem:[%s344_s0 + $0xc8] sm:$0xff] }
   0x9   :  { %139 = vst [vmem:[%s345_s1 + $0x8] sm:$0xff] %v138_v14  ;;  %v142_v16 = vld [vmem:[%s344_s0 + $0x58] sm:$0xff]  ;;  %141 = vst [vmem:[%s345_s1 + $0x78] sm:$0xff] %v140_v15  ;;  %v146_v18 = vld [vmem:[%s344_s0 + $0x48] sm:$0xff] }
   0xa   :  { %143 = vst [vmem:[%s345_s1 + $0x18] sm:$0xff] %v142_v16  ;;  %145 = vst [vmem:[%s345_s1 + $0x88] sm:$0xff] %v144_v17  ;;  %v148_v19 = vld [vmem:[%s344_s0 + $0xb8] sm:$0xff]  ;;  %v152_v21 = vld [vmem:[%s344_s0 + $0xa8] sm:$0xff] }
   0xb   :  { %v150_v20 = vld [vmem:[%s344_s0 + $0x38] sm:$0xff]  ;;  %147 = vst [vmem:[%s345_s1 + $0x28] sm:$0xff] %v146_v18  ;;  %149 = vst [vmem:[%s345_s1 + $0x98] sm:$0xff] %v148_v19  ;;  %v154_v22 = vld [vmem:[%s344_s0 + $0x28] sm:$0xff] }
   0xc   :  { %151 = vst [vmem:[%s345_s1 + $0x38] sm:$0xff] %v150_v20  ;;  %v156_v23 = vld [vmem:[%s344_s0 + $0x98] sm:$0xff]  ;;  %153 = vst [vmem:[%s345_s1 + $0xa8] sm:$0xff] %v152_v21  ;;  %v160_v25 = vld [vmem:[%s344_s0 + $0x88] sm:$0xff] }
   0xd   :  { %155 = vst [vmem:[%s345_s1 + $0x48] sm:$0xff] %v154_v22  ;;  %157 = vst [vmem:[%s345_s1 + $0xb8] sm:$0xff] %v156_v23  ;;  %v158_v24 = vld [vmem:[%s344_s0 + $0x18] sm:$0xff]  ;;  %v162_v26 = vld [vmem:[%s344_s0 + $0x8] sm:$0xff] }
   0xe   :  { %159 = vst [vmem:[%s345_s1 + $0x58] sm:$0xff] %v158_v24  ;;  %161 = vst [vmem:[%s345_s1 + $0xc8] sm:$0xff] %v160_v25  ;;  %v164_v27 = vld [vmem:[%s344_s0 + $0x78] sm:$0xff] }
   0xf   :  { %163 = vst [vmem:[%s345_s1 + $0x68] sm:$0xff] %v162_v26  ;;  %165 = vst [vmem:[%s345_s1 + $0xd8] sm:$0xff] %v164_v27 }

// kernel: fno2d_forward.8
= control target key start
LH: loop header
LB: loop body
LE: loop exit
PB: predicated region body
PF: predicated region fallthrough
CT: control target
= control target key end

     0   :  { %s637_s15 = smov 0   ;;  %s689_s0 = inlined_call_operand.vmem [shape: bf16[128,128], index: 0, kind: input, shape index: {}]   ;;  %s690_s1 = inlined_call_operand.vmem [shape: bf16[128,128], index: 1, kind: input, shape index: {}]   ;;  %s691_s2 = inlined_call_operand.vmem [shape: f32[1,128], index: 2, kind: input, shape index: {}]   ;;  %s692_s3 = inlined_call_operand.vmem [shape: bf16[128,128], index: 3, kind: input, shape index: {}]   ;;  %s693_s4 = inlined_call_operand.vmem [shape: bf16[128,128], index: 4, kind: output, shape index: {}]  }
   0x1 LB: > { %s496_s16 = sadd.s32 4294967295, %s610_s15   ;;  %p500_p0 = scmp.ge.s32.totalorder %s610_s15, 1  ;;  %s610_s15 = sphi %s637_s15, %s14_s15  }
   0x2   : > { %p174_p1 = scmp.lt.s32.totalorder %s610_s15, 5 }
   0x4   : > { %p175_p2 = pnand %p500_p0, %p174_p1 }
   0x5   : > { %v586_v0 = vld [vmem:[%s690_s1] sm:$0xff] (!%p175_p2)   ;;  %s501_s19 = sshll.u32 (!%p175_p2), %s496_s16, 2  ;;  %v587_v1 = vld [vmem:[%s690_s1 + $0x8] sm:$0xff] (!%p175_p2)   ;;  %v588_v2 = vld [vmem:[%s690_s1 + $0x10] sm:$0xff] (!%p175_p2)  }
   0x6   : > { %178 = sbr.rel (%p175_p2) target bundleno = 285 (0x11d), region = 36  ;;  %p206_p3 = scmp.lt.s32.totalorder (!%p175_p2), %s501_s19, 15  ;;  %558 = vmatprep.subr.bf16.mxu0 (!%p175_p2), %v586_v0  ;;  %v589_v3 = vld [vmem:[%s690_s1 + $0x18] sm:$0xff] (!%p175_p2)   ;;  %v590_v5 = vld [vmem:[%s690_s1 + $0x20] sm:$0xff] (!%p175_p2)   ;;  %v591_v6 = vld [vmem:[%s690_s1 + $0x28] sm:$0xff] (!%p175_p2)  }
   0x7   : > { %559 = vmatpush3.bf16.msra.mxu0 (!%p175_p2), %v586_v0  ;;  %v592_v7 = vld [vmem:[%s690_s1 + $0x30] sm:$0xff] (!%p175_p2)   ;;  %v593_v8 = vld [vmem:[%s690_s1 + $0x38] sm:$0xff] (!%p175_p2)   ;;  %v507_v12 = vld [vmem:[%s691_s2] ss:$0 sm:$0xff] (!%p175_p2) }
   0x8   : > { %560 = vmatprep.subr.bf16.mxu0 (!%p175_p2), %v587_v1 }
   0xb   : > { %561 = vmatpush3.bf16.msra.mxu0 (!%p175_p2), %v587_v1 }
   0xc   : > { %562 = vmatprep.subr.bf16.mxu0 (!%p175_p2), %v588_v2 }
   0xd   : > { %s695_s19 = smov (!%p206_p3, %s501_s19), 15 }
   0xe   : > { %s654_s24 = sshll.u32 %s695_s19, 2 }
   0xf   : > { %s209_s27 = scalar_lea.vmem %s689_s0, %s654_s24  ;;  %563 = vmatpush3.bf16.msra.mxu0 %v588_v2  ;;  %s215_s14 = scalar_lea.vmem %s692_s3, %s654_s24 }
  0x10   : > { %v594_v4 = vld [vmem:[%s209_s27] sm:$0xff]   ;;  %564 = vmatprep.subr.bf16.mxu0 %v589_v3  ;;  %v595_v9 = vld [vmem:[%s209_s27 + $0x8] sm:$0xff]   ;;  %s221_s20 = scalar_lea.vmem %s693_s4, %s654_s24 }
  0x11   : > { %574 = vmatprep.mubr.bf16.mxu0 %v594_v4  ;;  %v546_v10 = vld [vmem:[%s215_s14 + $0x8] sm:$0xff]   ;;  %v529_v11 = vld [vmem:[%s215_s14] sm:$0xff]  }
  0x12   : > { %v534_v13 = vunpack.c.l.bf16 %v546_v10  ;;  %v530_v15 = vunpack.c.l.bf16 %v529_v11  ;;  %v535_v18 = vunpack.c.h.bf16 %v546_v10  ;;  %v531_v21 = vunpack.c.h.bf16 %v529_v11 }
  0x13   : > { %565 = vmatpush3.bf16.msra.mxu0 %v589_v3 }
  0x14   : > { %566 = vmatprep.subr.bf16.mxu0 %v590_v5 }
  0x17   : > { %567 = vmatpush3.bf16.msra.mxu0 %v590_v5 }
  0x18   : > { %568 = vmatprep.subr.bf16.mxu0 %v591_v6 }
  0x1b   : > { %569 = vmatpush3.bf16.msra.mxu0 %v591_v6 }
  0x1c   : > { %570 = vmatprep.subr.bf16.mxu0 %v592_v7 }
  0x1f   : > { %571 = vmatpush3.bf16.msra.mxu0 %v592_v7 }
  0x20   : > { %572 = vmatprep.subr.bf16.mxu0 %v593_v8 }
  0x23   : > { %573 = vmatpush3.bf16.msra.mxu0 %v593_v8 }
  0x26   : > { %575 = vmatmul.mubr.bf16.vlgmr.msra.gmra.mrb[0].mxu0 %v595_v9 }
  0xf9   : > { %v576_v14 = vpop.f32.mrb[0].mxu0 }
  0xfa   : > { %v354_v16 = vadd.f32 %v576_v14, %v507_v12  ;;  %v345_v17 = vpop.f32.mrb[1].mxu0 }
  0xfb   : > { %v346_v19 = vadd.f32 %v507_v12, %v345_v17  ;;  %v577_v20 = vpop.f32.mrb[2].mxu0 }
  0xfc   : > { %v370_v22 = vadd.f32 %v534_v13, %v354_v16  ;;  %v357_v23 = vadd.f32 %v577_v20, %v507_v12  ;;  %v348_v24 = vpop.f32.mrb[3].mxu0 }
  0xfd   : > { %v368_v25 = vadd.f32 %v530_v15, %v346_v19  ;;  %v349_v26 = vadd.f32 %v507_v12, %v348_v24 }
  0xfe   : > { %v378_v27 = vmul.f32 0.044715, %v370_v22  ;;  %v371_v28 = vadd.f32 %v535_v18, %v357_v23  ;;  %v374_v55 = vmul.f32 0.5, %v370_v22 }
  0xff   : > { %v376_v29 = vmul.f32 0.044715, %v368_v25  ;;  %v369_v30 = vadd.f32 %v531_v21, %v349_v26  ;;  %v372_v58 = vmul.f32 0.5, %v368_v25 }
 0x100   : > { %v382_v31 = vmul.f32 %v378_v27, %v370_v22  ;;  %v379_v32 = vmul.f32 0.044715, %v371_v28  ;;  %v375_v56 = vmul.f32 0.5, %v371_v28 }
 0x101   : > { %v380_v33 = vmul.f32 %v376_v29, %v368_v25  ;;  %v377_v34 = vmul.f32 0.044715, %v369_v30  ;;  %v373_v59 = vmul.f32 0.5, %v369_v30 }
 0x102   : > { %v386_v35 = vmul.f32 %v382_v31, %v370_v22  ;;  %v383_v36 = vmul.f32 %v379_v32, %v371_v28 }
 0x103   : > { %v384_v37 = vmul.f32 %v380_v33, %v368_v25  ;;  %v381_v38 = vmul.f32 %v377_v34, %v369_v30 }
 0x104   : > { %v390_v39 = vadd.f32 %v386_v35, %v370_v22  ;;  %v387_v40 = vmul.f32 %v383_v36, %v371_v28 }
 0x105   : > { %v388_v41 = vadd.f32 %v384_v37, %v368_v25  ;;  %v385_v42 = vmul.f32 %v381_v38, %v369_v30 }
 0x106   : > { %v394_v43 = vmul.f32 0.7978846, %v390_v39  ;;  %v391_v44 = vadd.f32 %v387_v40, %v371_v28 }
 0x107   : > { %v392_v45 = vmul.f32 0.7978846, %v388_v41  ;;  %v389_v46 = vadd.f32 %v385_v42, %v369_v30 }
 0x108   : > { %596 = vtanh.f32 %v394_v43  ;;  %v395_v47 = vmul.f32 0.7978846, %v391_v44 }
 0x109   : > { %598 = vtanh.f32 %v392_v45  ;;  %v393_v48 = vmul.f32 0.7978846, %v389_v46 }
 0x10a   : > { %600 = vtanh.f32 %v395_v47 }
 0x10b   : > { %602 = vtanh.f32 %v393_v48 }
 0x112   : > { %v597_v49 = vpop.eup %596 }
 0x113   : > { %v599_v50 = vpop.eup %598  ;;  %v402_v51 = vadd.f32 1.0, %v597_v49 }
 0x114   : > { %v601_v52 = vpop.eup %600  ;;  %v400_v53 = vadd.f32 1.0, %v599_v50 }
 0x115   : > { %v603_v54 = vpop.eup %602  ;;  %v403_v57 = vadd.f32 1.0, %v601_v52  ;;  %v406_v61 = vmul.f32 %v402_v51, %v374_v55 }
 0x116   : > { %v401_v60 = vadd.f32 1.0, %v603_v54  ;;  %v404_v63 = vmul.f32 %v400_v53, %v372_v58 }
 0x117   : > { %v407_v62 = vmul.f32 %v403_v57, %v375_v56 }
 0x118   : > { %v405_v0 = vmul.f32 %v401_v60, %v373_v59 }
 0x119   : > { %v544_v1 = vpack.c.bf16 %v407_v62, %v406_v61 }
 0x11a   : > { %v539_v2 = vpack.c.bf16 %v405_v0, %v404_v63 }
 0x11b   : > { %547 = vst [vmem:[%s221_s20 + $0x8] sm:$0xff] %v544_v1  }
 0x11c   : > { %540 = vst [vmem:[%s221_s20] sm:$0xff] %v539_v2  }
 0x11d PF: > { %s14_s15 = sadd.s32 1, %s610_s15  }
 0x11e   : > { %p11_p4 = scmp.ge.s32.totalorder %s14_s15, 6  }
 0x120   :  { %13 = sbr.rel (!%p11_p4) target bundleno = 1 (0x1), region = 69 }

// kernel: fno2d_forward.12
= control target key start
LH: loop header
LB: loop body
LE: loop exit
PB: predicated region body
PF: predicated region fallthrough
CT: control target
= control target key end

     0   :  { %s593_s15 = smov 0   ;;  %s645_s0 = inlined_call_operand.vmem [shape: bf16[128,128], index: 0, kind: input, shape index: {}]   ;;  %s646_s1 = inlined_call_operand.vmem [shape: bf16[128,128], index: 1, kind: input, shape index: {}]   ;;  %s647_s2 = inlined_call_operand.vmem [shape: f32[1,128], index: 2, kind: input, shape index: {}]   ;;  %s648_s3 = inlined_call_operand.vmem [shape: bf16[128,128], index: 3, kind: input, shape index: {}]   ;;  %s649_s4 = inlined_call_operand.vmem [shape: bf16[128,128], index: 4, kind: output, shape index: {}]  }
   0x1 LB: > { %s460_s16 = sadd.s32 4294967295, %s566_s15   ;;  %p464_p0 = scmp.ge.s32.totalorder %s566_s15, 1  ;;  %s566_s15 = sphi %s593_s15, %s14_s15  }
   0x2   : > { %p174_p1 = scmp.lt.s32.totalorder %s566_s15, 5 }
   0x4   : > { %p175_p2 = pnand %p464_p0, %p174_p1 }
   0x5   : > { %v550_v0 = vld [vmem:[%s646_s1] sm:$0xff] (!%p175_p2)   ;;  %s465_s19 = sshll.u32 (!%p175_p2), %s460_s16, 2  ;;  %v551_v1 = vld [vmem:[%s646_s1 + $0x8] sm:$0xff] (!%p175_p2)   ;;  %v552_v2 = vld [vmem:[%s646_s1 + $0x10] sm:$0xff] (!%p175_p2)  }
   0x6   : > { %178 = sbr.rel (%p175_p2) target bundleno = 260 (0x104), region = 36  ;;  %p206_p3 = scmp.lt.s32.totalorder (!%p175_p2), %s465_s19, 15  ;;  %522 = vmatprep.subr.bf16.mxu0 (!%p175_p2), %v550_v0  ;;  %v553_v3 = vld [vmem:[%s646_s1 + $0x18] sm:$0xff] (!%p175_p2)   ;;  %v554_v5 = vld [vmem:[%s646_s1 + $0x20] sm:$0xff] (!%p175_p2)   ;;  %v555_v6 = vld [vmem:[%s646_s1 + $0x28] sm:$0xff] (!%p175_p2)  }
   0x7   : > { %523 = vmatpush3.bf16.msra.mxu0 (!%p175_p2), %v550_v0  ;;  %v556_v7 = vld [vmem:[%s646_s1 + $0x30] sm:$0xff] (!%p175_p2)   ;;  %v557_v8 = vld [vmem:[%s646_s1 + $0x38] sm:$0xff] (!%p175_p2)   ;;  %v471_v10 = vld [vmem:[%s647_s2] ss:$0 sm:$0xff] (!%p175_p2) }
   0x8   : > { %524 = vmatprep.subr.bf16.mxu0 (!%p175_p2), %v551_v1 }
   0xb   : > { %525 = vmatpush3.bf16.msra.mxu0 (!%p175_p2), %v551_v1 }
   0xc   : > { %526 = vmatprep.subr.bf16.mxu0 (!%p175_p2), %v552_v2 }
   0xd   : > { %s651_s19 = smov (!%p206_p3, %s465_s19), 15 }
   0xe   : > { %s610_s24 = sshll.u32 %s651_s19, 2 }
   0xf   : > { %s209_s27 = scalar_lea.vmem %s645_s0, %s610_s24  ;;  %527 = vmatpush3.bf16.msra.mxu0 %v552_v2  ;;  %s215_s14 = scalar_lea.vmem %s648_s3, %s610_s24 }
  0x10   : > { %v558_v4 = vld [vmem:[%s209_s27] sm:$0xff]   ;;  %528 = vmatprep.subr.bf16.mxu0 %v553_v3  ;;  %v559_v9 = vld [vmem:[%s209_s27 + $0x8] sm:$0xff]   ;;  %s221_s20 = scalar_lea.vmem %s649_s4, %s610_s24 }
  0x11   : > { %538 = vmatprep.mubr.bf16.mxu0 %v558_v4  ;;  %v510_v11 = vld [vmem:[%s215_s14 + $0x8] sm:$0xff]   ;;  %v493_v12 = vld [vmem:[%s215_s14] sm:$0xff]  }
  0x12   : > { %v498_v15 = vunpack.c.l.bf16 %v510_v11  ;;  %v499_v17 = vunpack.c.h.bf16 %v510_v11  ;;  %v494_v19 = vunpack.c.l.bf16 %v493_v12  ;;  %v495_v21 = vunpack.c.h.bf16 %v493_v12 }
  0x13   : > { %529 = vmatpush3.bf16.msra.mxu0 %v553_v3 }
  0x14   : > { %530 = vmatprep.subr.bf16.mxu0 %v554_v5 }
  0x17   : > { %531 = vmatpush3.bf16.msra.mxu0 %v554_v5 }
  0x18   : > { %532 = vmatprep.subr.bf16.mxu0 %v555_v6 }
  0x1b   : > { %533 = vmatpush3.bf16.msra.mxu0 %v555_v6 }
  0x1c   : > { %534 = vmatprep.subr.bf16.mxu0 %v556_v7 }
  0x1f   : > { %535 = vmatpush3.bf16.msra.mxu0 %v556_v7 }
  0x20   : > { %536 = vmatprep.subr.bf16.mxu0 %v557_v8 }
  0x23   : > { %537 = vmatpush3.bf16.msra.mxu0 %v557_v8 }
  0x26   : > { %539 = vmatmul.mubr.bf16.vlgmr.msra.gmra.mrb[0].mxu0 %v559_v9 }
  0xf9   : > { %v540_v13 = vpop.f32.mrb[0].mxu0 }
  0xfa   : > { %v354_v14 = vadd.f32 %v540_v13, %v471_v10  ;;  %v345_v16 = vpop.f32.mrb[1].mxu0 }
  0xfb   : > { %v346_v18 = vadd.f32 %v471_v10, %v345_v16  ;;  %v541_v20 = vpop.f32.mrb[2].mxu0 }
  0xfc   : > { %v357_v22 = vadd.f32 %v541_v20, %v471_v10  ;;  %v348_v23 = vpop.f32.mrb[3].mxu0  ;;  %v370_v25 = vadd.f32 %v498_v15, %v354_v14 }
  0xfd   : > { %v349_v24 = vadd.f32 %v471_v10, %v348_v23  ;;  %v368_v27 = vadd.f32 %v494_v19, %v346_v18 }
  0xfe   : > { %v371_v26 = vadd.f32 %v499_v17, %v357_v22 }
  0xff   : > { %v369_v28 = vadd.f32 %v495_v21, %v349_v24 }
 0x100   : > { %v508_v29 = vpack.c.bf16 %v371_v26, %v370_v25 }
 0x101   : > { %v503_v30 = vpack.c.bf16 %v369_v28, %v368_v27 }
 0x102   : > { %511 = vst [vmem:[%s221_s20 + $0x8] sm:$0xff] %v508_v29  }
 0x103   : > { %504 = vst [vmem:[%s221_s20] sm:$0xff] %v503_v30  }
 0x104 PF: > { %s14_s15 = sadd.s32 1, %s566_s15  }
 0x105   : > { %p11_p4 = scmp.ge.s32.totalorder %s14_s15, 6  }
 0x107   :  { %13 = sbr.rel (!%p11_p4) target bundleno = 1 (0x1), region = 69 }

// kernel: fno2d_forward.13
= control target key start
LH: loop header
LB: loop body
LE: loop exit
PB: predicated region body
PF: predicated region fallthrough
CT: control target
= control target key end

     0   :  { %s2334_s1 = inlined_call_operand.vmem [shape: bf16[2048,128], index: 1, kind: input, shape index: {}]   ;;  %s2335_s0 = inlined_call_operand.vmem [shape: bf16[8,2048], index: 0, kind: input, shape index: {}]   ;;  %s2336_s2 = inlined_call_operand.vmem [shape: f32[1,128], index: 2, kind: input, shape index: {}]   ;;  %s2337_s3 = inlined_call_operand.vmem [shape: f32[8,128], index: 3, kind: output, shape index: {}]  }
   0x1   :  { %v1756_v0 = vld [vmem:[%s2334_s1 + $0x40] sm:$0xff]   ;;  %v1760_v4 = vld [vmem:[%s2334_s1 + $0x48] sm:$0xff]   ;;  %v1764_v8 = vld [vmem:[%s2334_s1 + $0x50] sm:$0xff]  }
   0x2   :  { %v1757_v1 = vld [vmem:[%s2334_s1 + $0xc0] sm:$0xff]   ;;  %1580 = vmatprep.subr.bf16.mxu0 %v1756_v0  ;;  %v1761_v5 = vld [vmem:[%s2334_s1 + $0xc8] sm:$0xff]   ;;  %v1765_v9 = vld [vmem:[%s2334_s1 + $0xd0] sm:$0xff]  }
   0x3   :  { %v1758_v2 = vld [vmem:[%s2334_s1] sm:$0xff]   ;;  %1602 = vmatprep.subr.bf16.mxu1 %v1757_v1  ;;  %v1762_v6 = vld [vmem:[%s2334_s1 + $0x8] sm:$0xff]   ;;  %v1766_v10 = vld [vmem:[%s2334_s1 + $0x10] sm:$0xff]  }
   0x4   :  { %v1759_v3 = vld [vmem:[%s2334_s1 + $0x80] sm:$0xff]   ;;  %1581 = vmatpush3.bf16.msra.mxu0 %v1758_v2  ;;  %v1763_v7 = vld [vmem:[%s2334_s1 + $0x88] sm:$0xff]   ;;  %v1767_v11 = vld [vmem:[%s2334_s1 + $0x90] sm:$0xff]  }
   0x5   :  { %1603 = vmatpush3.bf16.msra.mxu1 %v1759_v3  ;;  %1582 = vmatprep.subr.bf16.mxu0 %v1760_v4  ;;  %v1768_v12 = vld [vmem:[%s2334_s1 + $0x58] sm:$0xff]   ;;  %v1772_v16 = vld [vmem:[%s2334_s1 + $0x60] sm:$0xff]   ;;  %v1776_v20 = vld [vmem:[%s2334_s1 + $0x68] sm:$0xff]  }
   0x6   :  { %1604 = vmatprep.subr.bf16.mxu1 %v1761_v5  ;;  %v1769_v13 = vld [vmem:[%s2334_s1 + $0xd8] sm:$0xff]   ;;  %v1773_v17 = vld [vmem:[%s2334_s1 + $0xe0] sm:$0xff]   ;;  %v1777_v21 = vld [vmem:[%s2334_s1 + $0xe8] sm:$0xff]  }
   0x7   :  { %v1770_v14 = vld [vmem:[%s2334_s1 + $0x18] sm:$0xff]   ;;  %v1774_v18 = vld [vmem:[%s2334_s1 + $0x20] sm:$0xff]   ;;  %v1778_v22 = vld [vmem:[%s2334_s1 + $0x28] sm:$0xff]  }
   0x8   :  { %1583 = vmatpush3.bf16.msra.mxu0 %v1762_v6  ;;  %v1771_v15 = vld [vmem:[%s2334_s1 + $0x98] sm:$0xff]   ;;  %v1775_v19 = vld [vmem:[%s2334_s1 + $0xa0] sm:$0xff]   ;;  %v1779_v23 = vld [vmem:[%s2334_s1 + $0xa8] sm:$0xff]  }
   0x9   :  { %1605 = vmatpush3.bf16.msra.mxu1 %v1763_v7  ;;  %1584 = vmatprep.subr.bf16.mxu0 %v1764_v8  ;;  %v1780_v24 = vld [vmem:[%s2334_s1 + $0x70] sm:$0xff]   ;;  %v1784_v28 = vld [vmem:[%s2334_s1 + $0x78] sm:$0xff]   ;;  %v15_v32 = vld [vmem:[%s2335_s0] sm:$0xff] }
   0xa   :  { %1606 = vmatprep.subr.bf16.mxu1 %v1765_v9  ;;  %v1781_v25 = vld [vmem:[%s2334_s1 + $0xf0] sm:$0xff]   ;;  %v1785_v29 = vld [vmem:[%s2334_s1 + $0xf8] sm:$0xff]   ;;  %v16_v33 = vld [vmem:[%s2335_s0 + $0x8] sm:$0xff]  ;;  %v1436_v34 = vcombine.low %v15_v32, %v15_v32  ;;  %v1437_v35 = vcombine.high %v15_v32, %v15_v32 }
   0xb   :  { %v1782_v26 = vld [vmem:[%s2334_s1 + $0x30] sm:$0xff]   ;;  %v1786_v30 = vld [vmem:[%s2334_s1 + $0x38] sm:$0xff]   ;;  %v1438_v36 = vcombine.low %v16_v33, %v16_v33  ;;  %v1439_v37 = vcombine.high %v16_v33, %v16_v33  ;;  %v1792_v38 = vld [vmem:[%s2334_s1 + $0x140] sm:$0xff]  }
   0xc   :  { %1585 = vmatpush3.bf16.msra.mxu0 %v1766_v10  ;;  %v1783_v27 = vld [vmem:[%s2334_s1 + $0xb0] sm:$0xff]   ;;  %v1787_v31 = vld [vmem:[%s2334_s1 + $0xb8] sm:$0xff]   ;;  %v1793_v39 = vld [vmem:[%s2334_s1 + $0x1c0] sm:$0xff]   ;;  %1142 = vmatprep.mubr.bf16.mxu0 %v1437_v35 }
   0xd   :  { %1607 = vmatpush3.bf16.msra.mxu1 %v1767_v11  ;;  %1586 = vmatprep.subr.bf16.mxu0 %v1768_v12  ;;  %v1794_v40 = vld [vmem:[%s2334_s1 + $0x100] sm:$0xff]   ;;  %v1796_v42 = vld [vmem:[%s2334_s1 + $0x148] sm:$0xff]   ;;  %v1800_v46 = vld [vmem:[%s2334_s1 + $0x150] sm:$0xff]  }
   0xe   :  { %1608 = vmatprep.subr.bf16.mxu1 %v1769_v13  ;;  %1182 = vmatprep.mubr.bf16.mxu1 %v1439_v37  ;;  %v1795_v41 = vld [vmem:[%s2334_s1 + $0x180] sm:$0xff]   ;;  %v1797_v43 = vld [vmem:[%s2334_s1 + $0x1c8] sm:$0xff]   ;;  %v1801_v47 = vld [vmem:[%s2334_s1 + $0x1d0] sm:$0xff]  }
   0xf   :  { %v1798_v44 = vld [vmem:[%s2334_s1 + $0x108] sm:$0xff]   ;;  %v1802_v48 = vld [vmem:[%s2334_s1 + $0x110] sm:$0xff]   ;;  %v1804_v50 = vld [vmem:[%s2334_s1 + $0x158] sm:$0xff]  }
  0x10   :  { %1587 = vmatpush3.bf16.msra.mxu0 %v1770_v14  ;;  %v1799_v45 = vld [vmem:[%s2334_s1 + $0x188] sm:$0xff]   ;;  %v1803_v49 = vld [vmem:[%s2334_s1 + $0x190] sm:$0xff]   ;;  %v1805_v51 = vld [vmem:[%s2334_s1 + $0x1d8] sm:$0xff]  }
  0x11   :  { %1609 = vmatpush3.bf16.msra.mxu1 %v1771_v15  ;;  %1588 = vmatprep.subr.bf16.mxu0 %v1772_v16  ;;  %v1806_v52 = vld [vmem:[%s2334_s1 + $0x118] sm:$0xff]   ;;  %v1808_v54 = vld [vmem:[%s2334_s1 + $0x160] sm:$0xff]   ;;  %v1812_v58 = vld [vmem:[%s2334_s1 + $0x168] sm:$0xff]  }
  0x12   :  { %1610 = vmatprep.subr.bf16.mxu1 %v1773_v17  ;;  %v1807_v53 = vld [vmem:[%s2334_s1 + $0x198] sm:$0xff]   ;;  %v1809_v55 = vld [vmem:[%s2334_s1 + $0x1e0] sm:$0xff]   ;;  %v1813_v59 = vld [vmem:[%s2334_s1 + $0x1e8] sm:$0xff]  }
  0x13   :  { %v1810_v56 = vld [vmem:[%s2334_s1 + $0x120] sm:$0xff]   ;;  %v1814_v60 = vld [vmem:[%s2334_s1 + $0x128] sm:$0xff]   ;;  %v1816_v62 = vld [vmem:[%s2334_s1 + $0x170] sm:$0xff]  }
  0x14   :  { %1589 = vmatpush3.bf16.msra.mxu0 %v1774_v18  ;;  %v1811_v57 = vld [vmem:[%s2334_s1 + $0x1a0] sm:$0xff]   ;;  %v1815_v61 = vld [vmem:[%s2334_s1 + $0x1a8] sm:$0xff]   ;;  %v1817_v63 = vld [vmem:[%s2334_s1 + $0x1f0] sm:$0xff]  }
  0x15   :  { %1611 = vmatpush3.bf16.msra.mxu1 %v1775_v19  ;;  %1590 = vmatprep.subr.bf16.mxu0 %v1776_v20  ;;  %v1818_v0 = vld [vmem:[%s2334_s1 + $0x130] sm:$0xff]   ;;  %v1820_v2 = vld [vmem:[%s2334_s1 + $0x178] sm:$0xff]   ;;  %v1828_v12 = vld [vmem:[%s2334_s1 + $0x240] sm:$0xff]  }
  0x16   :  { %1612 = vmatprep.subr.bf16.mxu1 %v1777_v21  ;;  %v1819_v1 = vld [vmem:[%s2334_s1 + $0x1b0] sm:$0xff]   ;;  %v1821_v3 = vld [vmem:[%s2334_s1 + $0x1f8] sm:$0xff]   ;;  %v1829_v13 = vld [vmem:[%s2334_s1 + $0x2c0] sm:$0xff]  }
  0x17   :  { %v1822_v4 = vld [vmem:[%s2334_s1 + $0x138] sm:$0xff]   ;;  %v17_v6 = vld [vmem:[%s2335_s0 + $0x10] sm:$0xff]  ;;  %v1830_v14 = vld [vmem:[%s2334_s1 + $0x200] sm:$0xff]  }
  0x18   :  { %1591 = vmatpush3.bf16.msra.mxu0 %v1778_v22  ;;  %v1823_v5 = vld [vmem:[%s2334_s1 + $0x1b8] sm:$0xff]   ;;  %v1440_v7 = vcombine.low %v17_v6, %v17_v6  ;;  %v1441_v8 = vcombine.high %v17_v6, %v17_v6  ;;  %v1831_v15 = vld [vmem:[%s2334_s1 + $0x280] sm:$0xff]   ;;  %v1832_v16 = vld [vmem:[%s2334_s1 + $0x248] sm:$0xff]  }
  0x19   :  { %1613 = vmatpush3.bf16.msra.mxu1 %v1779_v23  ;;  %1592 = vmatprep.subr.bf16.mxu0 %v1780_v24  ;;  %v18_v9 = vld [vmem:[%s2335_s0 + $0x18] sm:$0xff]  ;;  %v1833_v17 = vld [vmem:[%s2334_s1 + $0x2c8] sm:$0xff]   ;;  %v1836_v20 = vld [vmem:[%s2334_s1 + $0x250] sm:$0xff]  }
  0x1a   :  { %1614 = vmatprep.subr.bf16.mxu1 %v1781_v25  ;;  %v1442_v10 = vcombine.low %v18_v9, %v18_v9  ;;  %v1443_v11 = vcombine.high %v18_v9, %v18_v9  ;;  %v1834_v18 = vld [vmem:[%s2334_s1 + $0x208] sm:$0xff]   ;;  %v1837_v21 = vld [vmem:[%s2334_s1 + $0x2d0] sm:$0xff]   ;;  %v1840_v24 = vld [vmem:[%s2334_s1 + $0x258] sm:$0xff]  }
  0x1b   :  { %v1835_v19 = vld [vmem:[%s2334_s1 + $0x288] sm:$0xff]   ;;  %v1838_v22 = vld [vmem:[%s2334_s1 + $0x210] sm:$0xff]   ;;  %v1841_v25 = vld [vmem:[%s2334_s1 + $0x2d8] sm:$0xff]  }
  0x1c   :  { %1593 = vmatpush3.bf16.msra.mxu0 %v1782_v26  ;;  %v1839_v23 = vld [vmem:[%s2334_s1 + $0x290] sm:$0xff]   ;;  %v1842_v26 = vld [vmem:[%s2334_s1 + $0x218] sm:$0xff]   ;;  %v1848_v32 = vld [vmem:[%s2334_s1 + $0x268] sm:$0xff]  }
  0x1d   :  { %1615 = vmatpush3.bf16.msra.mxu1 %v1783_v27  ;;  %1594 = vmatprep.subr.bf16.mxu0 %v1784_v28  ;;  %v1843_v27 = vld [vmem:[%s2334_s1 + $0x298] sm:$0xff]   ;;  %v1844_v28 = vld [vmem:[%s2334_s1 + $0x260] sm:$0xff]   ;;  %v1849_v33 = vld [vmem:[%s2334_s1 + $0x2e8] sm:$0xff]  }
  0x1e   :  { %1616 = vmatprep.subr.bf16.mxu1 %v1785_v29  ;;  %v1845_v29 = vld [vmem:[%s2334_s1 + $0x2e0] sm:$0xff]   ;;  %v1851_v35 = vld [vmem:[%s2334_s1 + $0x2a8] sm:$0xff]   ;;  %v1853_v37 = vld [vmem:[%s2334_s1 + $0x2f0] sm:$0xff]  }
  0x1f   :  { %v1884_v6 = vld [vmem:[%s2334_s1 + $0x368] sm:$0xff]  }
  0x20   :  { %1595 = vmatpush3.bf16.msra.mxu0 %v1786_v30  ;;  %v1846_v30 = vld [vmem:[%s2334_s1 + $0x220] sm:$0xff]   ;;  %v1887_v9 = vld [vmem:[%s2334_s1 + $0x3a8] sm:$0xff]  }
  0x21   :  { %1617 = vmatpush3.bf16.msra.mxu1 %v1787_v31  ;;  %1624 = vmatprep.subr.bf16.mxu0 %v1792_v38  ;;  %v1847_v31 = vld [vmem:[%s2334_s1 + $0x2a0] sm:$0xff]   ;;  %v1854_v38 = vld [vmem:[%s2334_s1 + $0x230] sm:$0xff]  }
  0x22   :  { %1646 = vmatprep.subr.bf16.mxu1 %v1793_v39  ;;  %v1855_v39 = vld [vmem:[%s2334_s1 + $0x2b0] sm:$0xff]  }
  0x23   :  { %1143 = vmatmul.mubr.bf16.vlgmr.msra.gmra.mrb[0].mxu0 %v1436_v34  ;;  %v1850_v34 = vld [vmem:[%s2334_s1 + $0x228] sm:$0xff]  }
  0x24   :  { %1183 = vmatmul.mubr.bf16.vlgmr.msra.gmra.mrb[0].mxu1 %v1438_v36  ;;  %1625 = vmatpush3.bf16.msra.mxu0 %v1794_v40  ;;  %v1852_v36 = vld [vmem:[%s2334_s1 + $0x270] sm:$0xff]   ;;  %v1856_v40 = vld [vmem:[%s2334_s1 + $0x278] sm:$0xff]  }
  0x25   :  { %1647 = vmatpush3.bf16.msra.mxu1 %v1795_v41  ;;  %1626 = vmatprep.subr.bf16.mxu0 %v1796_v42  ;;  %v1857_v41 = vld [vmem:[%s2334_s1 + $0x2f8] sm:$0xff]  }
  0x26   :  { %1648 = vmatprep.subr.bf16.mxu1 %v1797_v43  ;;  %1222 = vmatprep.mubr.bf16.mxu0 %v1441_v8  ;;  %v1858_v42 = vld [vmem:[%s2334_s1 + $0x238] sm:$0xff]   ;;  %v1886_v8 = vld [vmem:[%s2334_s1 + $0x328] sm:$0xff]  }
  0x27   :  { %1262 = vmatprep.mubr.bf16.mxu1 %v1443_v11  ;;  %v1859_v43 = vld [vmem:[%s2334_s1 + $0x2b8] sm:$0xff]   ;;  %v1889_v11 = vld [vmem:[%s2334_s1 + $0x3f0] sm:$0xff]  }
  0x28   :  { %1627 = vmatpush3.bf16.msra.mxu0 %v1798_v44  ;;  %v19_v44 = vld [vmem:[%s2335_s0 + $0x20] sm:$0xff] }
  0x29   :  { %1649 = vmatpush3.bf16.msra.mxu1 %v1799_v45  ;;  %1628 = vmatprep.subr.bf16.mxu0 %v1800_v46  ;;  %v20_v45 = vld [vmem:[%s2335_s0 + $0x28] sm:$0xff]  ;;  %v1444_v46 = vcombine.low %v19_v44, %v19_v44 }
  0x2a   :  { %1650 = vmatprep.subr.bf16.mxu1 %v1801_v47  ;;  %v1445_v47 = vcombine.high %v19_v44, %v19_v44 }
  0x2c   :  { %1629 = vmatpush3.bf16.msra.mxu0 %v1802_v48  ;;  %v1446_v48 = vcombine.low %v20_v45, %v20_v45 }
  0x2d   :  { %1651 = vmatpush3.bf16.msra.mxu1 %v1803_v49  ;;  %1630 = vmatprep.subr.bf16.mxu0 %v1804_v50  ;;  %v1447_v49 = vcombine.high %v20_v45, %v20_v45  ;;  %v1864_v50 = vld [vmem:[%s2334_s1 + $0x340] sm:$0xff]  }
  0x2e   :  { %1652 = vmatprep.subr.bf16.mxu1 %v1805_v51  ;;  %v1865_v51 = vld [vmem:[%s2334_s1 + $0x3c0] sm:$0xff]  }
  0x30   :  { %1631 = vmatpush3.bf16.msra.mxu0 %v1806_v52  ;;  %v1866_v52 = vld [vmem:[%s2334_s1 + $0x300] sm:$0xff]  }
  0x31   :  { %1653 = vmatpush3.bf16.msra.mxu1 %v1807_v53  ;;  %1632 = vmatprep.subr.bf16.mxu0 %v1808_v54  ;;  %v1867_v53 = vld [vmem:[%s2334_s1 + $0x380] sm:$0xff]   ;;  %v1868_v54 = vld [vmem:[%s2334_s1 + $0x348] sm:$0xff]  }
  0x32   :  { %1654 = vmatprep.subr.bf16.mxu1 %v1809_v55  ;;  %v1869_v55 = vld [vmem:[%s2334_s1 + $0x3c8] sm:$0xff]  }
  0x34   :  { %1633 = vmatpush3.bf16.msra.mxu0 %v1810_v56  ;;  %v1870_v56 = vld [vmem:[%s2334_s1 + $0x308] sm:$0xff]  }
  0x35   :  { %1655 = vmatpush3.bf16.msra.mxu1 %v1811_v57  ;;  %1634 = vmatprep.subr.bf16.mxu0 %v1812_v58  ;;  %v1871_v57 = vld [vmem:[%s2334_s1 + $0x388] sm:$0xff]   ;;  %v1872_v58 = vld [vmem:[%s2334_s1 + $0x350] sm:$0xff]  }
  0x36   :  { %1656 = vmatprep.subr.bf16.mxu1 %v1813_v59  ;;  %v1873_v59 = vld [vmem:[%s2334_s1 + $0x3d0] sm:$0xff]  }
  0x38   :  { %1635 = vmatpush3.bf16.msra.mxu0 %v1814_v60  ;;  %v1874_v60 = vld [vmem:[%s2334_s1 + $0x310] sm:$0xff]  }
  0x39   :  { %1657 = vmatpush3.bf16.msra.mxu1 %v1815_v61  ;;  %1636 = vmatprep.subr.bf16.mxu0 %v1816_v62  ;;  %v1875_v61 = vld [vmem:[%s2334_s1 + $0x390] sm:$0xff]   ;;  %v1876_v62 = vld [vmem:[%s2334_s1 + $0x358] sm:$0xff]  }
  0x3a   :  { %1658 = vmatprep.subr.bf16.mxu1 %v1817_v63  ;;  %v1877_v63 = vld [vmem:[%s2334_s1 + $0x3d8] sm:$0xff]  }
  0x3c   :  { %1637 = vmatpush3.bf16.msra.mxu0 %v1818_v0  ;;  %v1878_v0 = vld [vmem:[%s2334_s1 + $0x318] sm:$0xff]  }
  0x3d   :  { %1659 = vmatpush3.bf16.msra.mxu1 %v1819_v1  ;;  %1638 = vmatprep.subr.bf16.mxu0 %v1820_v2  ;;  %v1879_v1 = vld [vmem:[%s2334_s1 + $0x398] sm:$0xff]   ;;  %v1880_v2 = vld [vmem:[%s2334_s1 + $0x360] sm:$0xff]  }
  0x3e   :  { %1660 = vmatprep.subr.bf16.mxu1 %v1821_v3  ;;  %v1881_v3 = vld [vmem:[%s2334_s1 + $0x3e0] sm:$0xff]  }
  0x40   :  { %1639 = vmatpush3.bf16.msra.mxu0 %v1822_v4  ;;  %v1882_v4 = vld [vmem:[%s2334_s1 + $0x320] sm:$0xff]  }
  0x41   :  { %1661 = vmatpush3.bf16.msra.mxu1 %v1823_v5  ;;  %1668 = vmatprep.subr.bf16.mxu0 %v1828_v12  ;;  %v1883_v5 = vld [vmem:[%s2334_s1 + $0x3a0] sm:$0xff]   ;;  %v1890_v12 = vld [vmem:[%s2334_s1 + $0x330] sm:$0xff]  }
  0x42   :  { %1690 = vmatprep.subr.bf16.mxu1 %v1829_v13  ;;  %v1891_v13 = vld [vmem:[%s2334_s1 + $0x3b0] sm:$0xff]  }
  0x43   :  { %1223 = vmatmul.mubr.bf16.vlgmr.msra.gmra.mrb[4].mxu0 %v1440_v7  ;;  %v1885_v7 = vld [vmem:[%s2334_s1 + $0x3e8] sm:$0xff]  }
  0x44   :  { %1263 = vmatmul.mubr.bf16.vlgmr.msra.gmra.mrb[4].mxu1 %v1442_v10  ;;  %1669 = vmatpush3.bf16.msra.mxu0 %v1830_v14  ;;  %v1888_v10 = vld [vmem:[%s2334_s1 + $0x370] sm:$0xff]   ;;  %v1892_v14 = vld [vmem:[%s2334_s1 + $0x378] sm:$0xff]  }
  0x45   :  { %1691 = vmatpush3.bf16.msra.mxu1 %v1831_v15  ;;  %1670 = vmatprep.subr.bf16.mxu0 %v1832_v16  ;;  %v1893_v15 = vld [vmem:[%s2334_s1 + $0x3f8] sm:$0xff]  }
  0x46   :  { %1692 = vmatprep.subr.bf16.mxu1 %v1833_v17  ;;  %1302 = vmatprep.mubr.bf16.mxu0 %v1445_v47  ;;  %v1894_v16 = vld [vmem:[%s2334_s1 + $0x338] sm:$0xff]  }
  0x47   :  { %1342 = vmatprep.mubr.bf16.mxu1 %v1447_v49  ;;  %v1895_v17 = vld [vmem:[%s2334_s1 + $0x3b8] sm:$0xff]  }
  0x48   :  { %1671 = vmatpush3.bf16.msra.mxu0 %v1834_v18  ;;  %v21_v18 = vld [vmem:[%s2335_s0 + $0x30] sm:$0xff] }
  0x49   :  { %1693 = vmatpush3.bf16.msra.mxu1 %v1835_v19  ;;  %1672 = vmatprep.subr.bf16.mxu0 %v1836_v20  ;;  %v22_v19 = vld [vmem:[%s2335_s0 + $0x38] sm:$0xff]  ;;  %v1448_v20 = vcombine.low %v21_v18, %v21_v18 }
  0x4a   :  { %1694 = vmatprep.subr.bf16.mxu1 %v1837_v21  ;;  %v1449_v21 = vcombine.high %v21_v18, %v21_v18 }
  0x4c   :  { %1673 = vmatpush3.bf16.msra.mxu0 %v1838_v22  ;;  %v1450_v22 = vcombine.low %v22_v19, %v22_v19 }
  0x4d   :  { %1695 = vmatpush3.bf16.msra.mxu1 %v1839_v23  ;;  %1674 = vmatprep.subr.bf16.mxu0 %v1840_v24  ;;  %v1451_v23 = vcombine.high %v22_v19, %v22_v19 }
  0x4e   :  { %1696 = vmatprep.subr.bf16.mxu1 %v1841_v25 }
  0x50   :  { %1675 = vmatpush3.bf16.msra.mxu0 %v1842_v26  ;;  %v1435_v26 = vld [vmem:[%s2336_s2] ss:$0 sm:$0xff] }
  0x51   :  { %1697 = vmatpush3.bf16.msra.mxu1 %v1843_v27  ;;  %1676 = vmatprep.subr.bf16.mxu0 %v1844_v28 }
  0x52   :  { %1698 = vmatprep.subr.bf16.mxu1 %v1845_v29 }
  0x54   :  { %1677 = vmatpush3.bf16.msra.mxu0 %v1846_v30 }
  0x55   :  { %1699 = vmatpush3.bf16.msra.mxu1 %v1847_v31  ;;  %1678 = vmatprep.subr.bf16.mxu0 %v1848_v32 }
  0x56   :  { %1700 = vmatprep.subr.bf16.mxu1 %v1849_v33 }
  0x58   :  { %1679 = vmatpush3.bf16.msra.mxu0 %v1850_v34 }
  0x59   :  { %1701 = vmatpush3.bf16.msra.mxu1 %v1851_v35  ;;  %1680 = vmatprep.subr.bf16.mxu0 %v1852_v36 }
  0x5a   :  { %1702 = vmatprep.subr.bf16.mxu1 %v1853_v37 }
  0x5c   :  { %1681 = vmatpush3.bf16.msra.mxu0 %v1854_v38 }
  0x5d   :  { %1703 = vmatpush3.bf16.msra.mxu1 %v1855_v39  ;;  %1682 = vmatprep.subr.bf16.mxu0 %v1856_v40 }
  0x5e   :  { %1704 = vmatprep.subr.bf16.mxu1 %v1857_v41 }
  0x60   :  { %1683 = vmatpush3.bf16.msra.mxu0 %v1858_v42 }
  0x61   :  { %1705 = vmatpush3.bf16.msra.mxu1 %v1859_v43  ;;  %1712 = vmatprep.subr.bf16.mxu0 %v1864_v50 }
  0x62   :  { %1734 = vmatprep.subr.bf16.mxu1 %v1865_v51 }
  0x63   :  { %1303 = vmatmul.mubr.bf16.vlgmr.msra.gmra.mrb[8].mxu0 %v1444_v46 }
  0x64   :  { %1343 = vmatmul.mubr.bf16.vlgmr.msra.gmra.mrb[8].mxu1 %v1446_v48  ;;  %1713 = vmatpush3.bf16.msra.mxu0 %v1866_v52 }
  0x65   :  { %1735 = vmatpush3.bf16.msra.mxu1 %v1867_v53  ;;  %1714 = vmatprep.subr.bf16.mxu0 %v1868_v54 }
  0x66   :  { %1736 = vmatprep.subr.bf16.mxu1 %v1869_v55  ;;  %1382 = vmatprep.mubr.bf16.mxu0 %v1449_v21 }
  0x67   :  { %1422 = vmatprep.mubr.bf16.mxu1 %v1451_v23 }
  0x68   :  { %1715 = vmatpush3.bf16.msra.mxu0 %v1870_v56 }
  0x69   :  { %1737 = vmatpush3.bf16.msra.mxu1 %v1871_v57  ;;  %1716 = vmatprep.subr.bf16.mxu0 %v1872_v58 }
  0x6a   :  { %1738 = vmatprep.subr.bf16.mxu1 %v1873_v59 }
  0x6c   :  { %1717 = vmatpush3.bf16.msra.mxu0 %v1874_v60 }
  0x6d   :  { %1739 = vmatpush3.bf16.msra.mxu1 %v1875_v61  ;;  %1718 = vmatprep.subr.bf16.mxu0 %v1876_v62 }
  0x6e   :  { %1740 = vmatprep.subr.bf16.mxu1 %v1877_v63 }
  0x70   :  { %1719 = vmatpush3.bf16.msra.mxu0 %v1878_v0 }
  0x71   :  { %1741 = vmatpush3.bf16.msra.mxu1 %v1879_v1  ;;  %1720 = vmatprep.subr.bf16.mxu0 %v1880_v2 }
  0x72   :  { %1742 = vmatprep.subr.bf16.mxu1 %v1881_v3 }
  0x74   :  { %1721 = vmatpush3.bf16.msra.mxu0 %v1882_v4 }
  0x75   :  { %1743 = vmatpush3.bf16.msra.mxu1 %v1883_v5  ;;  %1722 = vmatprep.subr.bf16.mxu0 %v1884_v6 }
  0x76   :  { %1744 = vmatprep.subr.bf16.mxu1 %v1885_v7 }
  0x78   :  { %1723 = vmatpush3.bf16.msra.mxu0 %v1886_v8 }
  0x79   :  { %1745 = vmatpush3.bf16.msra.mxu1 %v1887_v9  ;;  %1724 = vmatprep.subr.bf16.mxu0 %v1888_v10 }
  0x7a   :  { %1746 = vmatprep.subr.bf16.mxu1 %v1889_v11 }
  0x7c   :  { %1725 = vmatpush3.bf16.msra.mxu0 %v1890_v12 }
  0x7d   :  { %1747 = vmatpush3.bf16.msra.mxu1 %v1891_v13  ;;  %1726 = vmatprep.subr.bf16.mxu0 %v1892_v14 }
  0x7e   :  { %1748 = vmatprep.subr.bf16.mxu1 %v1893_v15 }
  0x80   :  { %1727 = vmatpush3.bf16.msra.mxu0 %v1894_v16 }
  0x81   :  { %1749 = vmatpush3.bf16.msra.mxu1 %v1895_v17 }
  0x83   :  { %1383 = vmatmul.mubr.bf16.vlgmr.msra.gmra.mrb[12].mxu0 %v1448_v20 }
  0x84   :  { %1423 = vmatmul.mubr.bf16.vlgmr.msra.gmra.mrb[12].mxu1 %v1450_v22 }
  0xf6   :  { %v1596_v24 = vpop.f32.mrb[0].mxu0 }
  0xf7   :  { %v1618_v25 = vpop.f32.mrb[0].mxu1  ;;  %v1597_v27 = vpop.f32.mrb[1].mxu0 }
  0xf8   :  { %v1619_v28 = vpop.f32.mrb[1].mxu1  ;;  %v1598_v29 = vadd.f32 %v1597_v27, %v1596_v24  ;;  %v1599_v31 = vpop.f32.mrb[2].mxu0 }
  0xf9   :  { %v1620_v30 = vadd.f32 %v1619_v28, %v1618_v25  ;;  %v1621_v32 = vpop.f32.mrb[2].mxu1  ;;  %v1600_v33 = vpop.f32.mrb[3].mxu0 }
  0xfa   :  { %v1622_v34 = vpop.f32.mrb[3].mxu1  ;;  %v1145_v35 = vadd.f32 %v1598_v29, %v1435_v26 }
  0xfc   :  { %v1185_v36 = vadd.f32 %v1620_v30, %v1145_v35 }
 0x116   :  { %v1640_v37 = vpop.f32.mrb[4].mxu0 }
 0x117   :  { %v1662_v38 = vpop.f32.mrb[4].mxu1  ;;  %v1641_v39 = vpop.f32.mrb[5].mxu0 }
 0x118   :  { %v1663_v40 = vpop.f32.mrb[5].mxu1  ;;  %v1642_v41 = vadd.f32 %v1641_v39, %v1640_v37  ;;  %v1643_v43 = vpop.f32.mrb[6].mxu0 }
 0x119   :  { %v1664_v42 = vadd.f32 %v1663_v40, %v1662_v38  ;;  %v1665_v44 = vpop.f32.mrb[6].mxu1  ;;  %v1644_v45 = vpop.f32.mrb[7].mxu0 }
 0x11a   :  { %v1666_v46 = vpop.f32.mrb[7].mxu1  ;;  %v1225_v47 = vadd.f32 %v1642_v41, %v1185_v36 }
 0x11c   :  { %v1265_v48 = vadd.f32 %v1664_v42, %v1225_v47 }
 0x136   :  { %v1684_v49 = vpop.f32.mrb[8].mxu0 }
 0x137   :  { %v1706_v50 = vpop.f32.mrb[8].mxu1  ;;  %v1685_v51 = vpop.f32.mrb[9].mxu0 }
 0x138   :  { %v1686_v52 = vadd.f32 %v1685_v51, %v1684_v49  ;;  %v1707_v53 = vpop.f32.mrb[9].mxu1  ;;  %v1687_v54 = vpop.f32.mrb[10].mxu0 }
 0x139   :  { %v1708_v55 = vadd.f32 %v1707_v53, %v1706_v50  ;;  %v1709_v56 = vpop.f32.mrb[10].mxu1  ;;  %v1688_v57 = vpop.f32.mrb[11].mxu0 }
 0x13a   :  { %v1305_v58 = vadd.f32 %v1686_v52, %v1265_v48  ;;  %v1710_v59 = vpop.f32.mrb[11].mxu1 }
 0x13c   :  { %v1345_v60 = vadd.f32 %v1708_v55, %v1305_v58 }
 0x156   :  { %v1728_v61 = vpop.f32.mrb[12].mxu0 }
 0x157   :  { %v1750_v62 = vpop.f32.mrb[12].mxu1  ;;  %v1729_v63 = vpop.f32.mrb[13].mxu0 }
 0x158   :  { %v1730_v0 = vadd.f32 %v1729_v63, %v1728_v61  ;;  %v1751_v1 = vpop.f32.mrb[13].mxu1  ;;  %v1731_v2 = vpop.f32.mrb[14].mxu0 }
 0x159   :  { %v1752_v3 = vadd.f32 %v1751_v1, %v1750_v62  ;;  %v1753_v4 = vpop.f32.mrb[14].mxu1  ;;  %v1732_v5 = vpop.f32.mrb[15].mxu0 }
 0x15a   :  { %v1385_v6 = vadd.f32 %v1730_v0, %v1345_v60  ;;  %v1754_v7 = vpop.f32.mrb[15].mxu1 }
 0x15c   :  { %v1425_v8 = vadd.f32 %v1752_v3, %v1385_v6 }
 0x15e   :  { %1430 = vst [vmem:[%s2337_s3] sm:$0xff] %v1425_v8 }

</bundles_post_ra>
